<compile_context>
chip_gen: v5e
topology: v5e:2x2
jax: 0.10.0
libtpu: 0.0.40
codegen_flags: <defaults>
</compile_context>

<pallas_src>
import math

import jax
import jax.numpy as jnp
from jax.experimental import pallas as pl
from jax.experimental.pallas import tpu as pltpu

NUM_POS_FEATS = 64            # -> 2*num_pos_feats = 128 PE channels
TEMPERATURE = 10000.0
PE_SCALE = 2.0 * math.pi
STRIDES = [2, 4, 8]           # backbone.strides
NUM_CHANNELS = [32, 64, 128]  # backbone.num_channels

_HALF_PI = math.pi / 2.0
_PE_CHANNELS = 2 * NUM_POS_FEATS
# dim_t[k] = T ** (2*floor(k/2)/npf); bake 1/dim_t as compile-time constants.
_INV_DIM_T = [
    1.0 / (TEMPERATURE ** (2.0 * (k // 2) / NUM_POS_FEATS))
    for k in range(NUM_POS_FEATS)
]

# VMEM / tiling budget: one set of numbers that is safe on v5e, v6e and v7x.
_OUT_BLOCK_BUDGET_BYTES = 4 * 1024 * 1024   # per output block (double-buffers to 8 MiB)
_VMEM_LIMIT_BYTES = 32 * 1024 * 1024        # explicit scoped-VMEM limit


# ---------------------------------------------------------------------------
# Tile-size helper (shared by both kernels)
# ---------------------------------------------------------------------------
def _choose_span_tile(M, B, out_rows, out_itemsize):
    """Lane-dim tile for a (1, out_rows, T) output block.

    Keeps the output block <= ~4 MiB, uses a multiple of 128 (or the full
    span, which is always legal), and when B == 1 splits the span into >= 2
    blocks so both megacore TensorCores get work.
    Ragged tails (M % T != 0) are safe: the math is per-column independent
    and Pallas discards out-of-bounds output writes.
    """
    if M <= 128:
        return M
    cap = max(128, (_OUT_BLOCK_BUDGET_BYTES // (out_rows * out_itemsize)) // 128 * 128)
    t = min(cap, M)
    if B == 1:
        t = min(t, -(-M // 2))          # ceil(M/2) -> at least 2 spatial blocks
    t = max(128, (t // 128) * 128)
    return M if t >= M else t


# ---------------------------------------------------------------------------
# Pallas kernel 1: channel-first 1x1-conv projection + bias + ReLU
#   blocks: x (1, C_in, TM), w (C_out, C_in), b (C_out, 1) -> o (1, C_out, TM)
#   Spatial dim TM sits on lanes (lane-dense), output written in flat NCHW.
# ---------------------------------------------------------------------------
def _proj_kernel(x_ref, w_ref, b_ref, o_ref):
    x = x_ref[0]                                               # (C_in, TM)
    acc = jnp.dot(w_ref[...], x, preferred_element_type=jnp.float32)
    acc = acc + b_ref[...]                                     # (C_out,1) bcast
    o_ref[0] = jnp.maximum(acc, 0.0).astype(o_ref.dtype)


def conv1x1_relu_nchw(x_flat, w, b_col, out_dtype=jnp.float32):
    """x_flat: (B, C_in, M); w: (C_out, C_in); b_col: (C_out, 1) -> (B, C_out, M)."""
    B, C_in, M = x_flat.shape
    C_out = w.shape[0]
    TM = _choose_span_tile(M, B, C_out, jnp.dtype(out_dtype).itemsize)
    grid = (B, pl.cdiv(M, TM))
    return pl.pallas_call(
        _proj_kernel,
        out_shape=jax.ShapeDtypeStruct((B, C_out, M), out_dtype),
        grid=grid,
        in_specs=[
            pl.BlockSpec((1, C_in, TM), lambda bi, mi: (bi, 0, mi)),
            pl.BlockSpec((C_out, C_in), lambda bi, mi: (0, 0)),
            pl.BlockSpec((C_out, 1), lambda bi, mi: (0, 0)),
        ],
        out_specs=pl.BlockSpec((1, C_out, TM), lambda bi, mi: (bi, 0, mi)),
        compiler_params=pltpu.CompilerParams(
            dimension_semantics=("parallel", "parallel"),
            vmem_limit_bytes=_VMEM_LIMIT_BYTES),
    )(x_flat, w, b_col)


# ---------------------------------------------------------------------------
# Pallas kernel 2: sine position embedding, lane-dense flat-NCHW output.
#   blocks: y/x (1, 1, TS), inv/phase (128, 1) -> o (1, 128, TS)
#   out[k, m] = sin(v[m] * inv_dim_t[k] + phase[k]),  v = y for k<64 else x.
#   (cos(a) = sin(a + pi/2) -> exactly one transcendental per element.)
# ---------------------------------------------------------------------------
def _sine_pe_kernel(y_ref, x_ref, inv_ref, phase_ref, o_ref):
    y = y_ref[0]                                   # (1, TS), already *2*pi-normalized
    x = x_ref[0]                                   # (1, TS)
    inv = inv_ref[...]                             # (128, 1)
    phase = phase_ref[...]                         # (128, 1)
    rid = jax.lax.broadcasted_iota(jnp.int32, (_PE_CHANNELS, 1), 0)
    v = jnp.where(rid < NUM_POS_FEATS, y, x)       # (128, TS): y-half / x-half
    o_ref[0] = jnp.sin(v * inv + phase).astype(o_ref.dtype)


def sine_position_embedding(mask, out_dtype=jnp.float32):
    """mask: (B, H, W) bool (True = padded) -> (B, 2*num_pos_feats, H, W)."""
    B, H, W = mask.shape
    not_mask = (~mask).astype(jnp.float32)
    y_embed = jnp.cumsum(not_mask, axis=1)
    x_embed = jnp.cumsum(not_mask, axis=2)
    eps = 1e-6
    y_embed = y_embed / (y_embed[:, -1:, :] + eps) * PE_SCALE
    x_embed = x_embed / (x_embed[:, :, -1:] + eps) * PE_SCALE

    M = H * W
    y_flat = y_embed.reshape(B, 1, M)              # free metadata reshapes
    x_flat = x_embed.reshape(B, 1, M)

    inv = jnp.asarray(_INV_DIM_T + _INV_DIM_T, jnp.float32).reshape(_PE_CHANNELS, 1)
    phase = jnp.asarray(
        [(_HALF_PI if (k % 2) else 0.0) for k in range(NUM_POS_FEATS)] * 2,
        jnp.float32).reshape(_PE_CHANNELS, 1)

    TS = _choose_span_tile(M, B, _PE_CHANNELS, jnp.dtype(out_dtype).itemsize)
    grid = (B, pl.cdiv(M, TS))
    out = pl.pallas_call(
        _sine_pe_kernel,
        out_shape=jax.ShapeDtypeStruct((B, _PE_CHANNELS, M), out_dtype),
        grid=grid,
        in_specs=[
            pl.BlockSpec((1, 1, TS), lambda bi, mi: (bi, 0, mi)),
            pl.BlockSpec((1, 1, TS), lambda bi, mi: (bi, 0, mi)),
            pl.BlockSpec((_PE_CHANNELS, 1), lambda bi, mi: (0, 0)),
            pl.BlockSpec((_PE_CHANNELS, 1), lambda bi, mi: (0, 0)),
        ],
        out_specs=pl.BlockSpec((1, _PE_CHANNELS, TS), lambda bi, mi: (bi, 0, mi)),
        compiler_params=pltpu.CompilerParams(
            dimension_semantics=("parallel", "parallel"),
            vmem_limit_bytes=_VMEM_LIMIT_BYTES),
    )(y_flat, x_flat, inv, phase)
    return out.reshape(B, _PE_CHANNELS, H, W)      # free metadata reshape


# ---------------------------------------------------------------------------
# Synthetic backbone + BackboneWithPE forward
# ---------------------------------------------------------------------------
def _avg_pool2(x):
    B, C, H, W = x.shape
    return x.reshape(B, C, H // 2, 2, W // 2, 2).mean(axis=(3, 5))


def backbone_forward(x, params, out_dtype=jnp.float32):
    """x: (B, C_in, H, W) -> dict of (B, C_out_i, H/s_i, W/s_i) feature maps."""
    B, C_in, H, W = x.shape
    outputs = {}
    pooled = x
    prev_stride = 1
    for i, (s, c_out) in enumerate(zip(STRIDES, NUM_CHANNELS)):
        # Hierarchical pooling: reuse the previous level's pooled map so the
        # full-resolution x is only read once.
        while prev_stride < s:
            pooled = _avg_pool2(pooled)
            prev_stride *= 2
        Hs, Ws = H // s, W // s
        w, b = params[i]                                  # (C_out, C_in), (C_out,)
        flat = pooled.reshape(B, C_in, Hs * Ws)           # free metadata reshape
        out = conv1x1_relu_nchw(flat, w, b.reshape(c_out, 1), out_dtype)
        outputs[str(i)] = out.reshape(B, c_out, Hs, Ws)   # free metadata reshape
    return outputs


def backbone_with_pe_forward(x, mask, params, out_dtype=jnp.float32,
                             shared_mask=False):
    """Mirrors BackboneWithPE.forward: sorted backbone outputs + per-level PE.

    shared_mask=True: the padding mask is identical across the batch (common
    fixed-size inference) -> compute PE once and broadcast (B x less HBM).
    """
    backbone_outputs = backbone_forward(x, params, out_dtype=out_dtype)
    features = []   # list of (tensor NCHW, mask BHW)  ~ NestedTensor
    for key in sorted(backbone_outputs.keys()):
        s = STRIDES[int(key)]
        features.append((backbone_outputs[key], mask[:, ::s, ::s]))
    pos_embeds = []
    for (_, m) in features:
        if shared_mask:
            pe = sine_position_embedding(m[:1], out_dtype=out_dtype)
            pe = jnp.broadcast_to(pe, (m.shape[0],) + pe.shape[1:])
        else:
            pe = sine_position_embedding(m, out_dtype=out_dtype)
        pos_embeds.append(pe)
    return features, pos_embeds


# ---------------------------------------------------------------------------
# Pure-JAX reference (for a sanity check)
# ---------------------------------------------------------------------------
def _ref_pe(mask):
    B, H, W = mask.shape
    not_mask = (~mask).astype(jnp.float32)
    y_embed = jnp.cumsum(not_mask, axis=1)
    x_embed = jnp.cumsum(not_mask, axis=2)
    eps = 1e-6
    y_embed = y_embed / (y_embed[:, -1:, :] + eps) * PE_SCALE
    x_embed = x_embed / (x_embed[:, :, -1:] + eps) * PE_SCALE
    k = jnp.arange(NUM_POS_FEATS, dtype=jnp.float32)
    dim_t = TEMPERATURE ** (2.0 * jnp.floor(k / 2.0) / NUM_POS_FEATS)
    px = x_embed[..., None] / dim_t
    py = y_embed[..., None] / dim_t
    px = jnp.stack((jnp.sin(px[..., 0::2]), jnp.cos(px[..., 1::2])), axis=4).reshape(
        B, H, W, NUM_POS_FEATS)
    py = jnp.stack((jnp.sin(py[..., 0::2]), jnp.cos(py[..., 1::2])), axis=4).reshape(
        B, H, W, NUM_POS_FEATS)
    return jnp.transpose(jnp.concatenate([py, px], axis=3), (0, 3, 1, 2))


if __name__ == "__main__":
    key = jax.random.PRNGKey(0)
    B, C_IN, H, W = 2, 4, 16, 16

    k_x, *k_params = jax.random.split(key, 1 + 2 * len(STRIDES))
    x = jax.random.normal(k_x, (B, C_IN, H, W), dtype=jnp.float32)
    mask = jnp.zeros((B, H, W), dtype=bool)  # no padding

    params = []
    for i, c_out in enumerate(NUM_CHANNELS):
        w = jax.random.normal(k_params[2 * i], (c_out, C_IN), jnp.float32) * 0.1
        b = jax.random.normal(k_params[2 * i + 1], (c_out,), jnp.float32) * 0.01
        params.append((w, b))

    # --- f32 path (matches PyTorch module semantics) -----------------------
    features, pos_embeds = backbone_with_pe_forward(x, mask, params)
    jax.block_until_ready((features, pos_embeds))

    for i, ((feat, m), pe) in enumerate(zip(features, pos_embeds)):
        s, c_out = STRIDES[i], NUM_CHANNELS[i]
        assert feat.shape == (B, c_out, H // s, W // s), feat.shape
        assert pe.shape == (B, _PE_CHANNELS, H // s, W // s), pe.shape
        # reference: direct s-strided average pool + 1x1 conv + relu
        pooled = x.reshape(B, C_IN, H // s, s, W // s, s).mean(axis=(3, 5))
        ref_feat = jnp.maximum(
            jnp.einsum("dc,bchw->bdhw", params[i][0], pooled)
            + params[i][1][None, :, None, None], 0.0)
        assert jnp.allclose(feat, ref_feat, atol=1e-4), "feature mismatch"
        assert jnp.allclose(pe, _ref_pe(m), atol=1e-4), "pos-embed mismatch"

    # --- bf16 + batch-invariant-PE path (smoke test of the fast options) ---
    feats16, pes16 = backbone_with_pe_forward(
        x, mask, params, out_dtype=jnp.bfloat16, shared_mask=True)
    jax.block_until_ready((feats16, pes16))
    for (feat16, _), pe16 in zip(feats16, pes16):
        assert feat16.dtype == jnp.bfloat16 and pe16.dtype == jnp.bfloat16

    print("KERNEL_OK")
</pallas_src>

<mosaic_0001>
module attributes {stable_mosaic.version = 11 : i64} {
  func.func @_proj_kernel(%arg0: i32, %arg1: i32, %arg2: memref<1x4x64xf32, #tpu.memory_space<vmem>>, %arg3: memref<32x4xf32, #tpu.memory_space<vmem>>, %arg4: memref<32x1xf32, #tpu.memory_space<vmem>>, %arg5: memref<1x32x64xf32, #tpu.memory_space<vmem>>) attributes {dimension_semantics = [#tpu.dimension_semantics<parallel>, #tpu.dimension_semantics<parallel>], iteration_bounds = array<i64: 2, 1>, scalar_prefetch = 0 : i64, scratch_operands = 0 : i64, tpu.core_type = #tpu.core_type<tc>, window_params = [{transform_indices = @transform_0, window_bounds = array<i64: 1, 4, 64>}, {pipeline_mode = #tpu.pipeline_mode<synchronous>, transform_indices = @transform_1, window_bounds = array<i64: 32, 4>}, {pipeline_mode = #tpu.pipeline_mode<synchronous>, transform_indices = @transform_2, window_bounds = array<i64: 32, 1>}, {transform_indices = @transform_3, window_bounds = array<i64: 1, 32, 64>}]} {
    %c0 = arith.constant 0 : index
    %c0_0 = arith.constant 0 : index
    %c0_1 = arith.constant 0 : index
    %0 = vector.load %arg2[%c0, %c0_0, %c0_1] : memref<1x4x64xf32, #tpu.memory_space<vmem>>, vector<1x4x64xf32>
    %1 = vector.shape_cast %0 : vector<1x4x64xf32> to vector<4x64xf32>
    %c0_2 = arith.constant 0 : index
    %c0_3 = arith.constant 0 : index
    %2 = vector.load %arg3[%c0_2, %c0_3] : memref<32x4xf32, #tpu.memory_space<vmem>>, vector<32x4xf32>
    %cst = arith.constant dense<0.000000e+00> : vector<32x64xf32>
    %3 = tpu.matmul %2, %1, %cst {dimension_numbers = #tpu.dot_dimension_numbers<[1], [0], [0], [1], [0, 0, 1, 1], [], []>} : vector<32x4xf32>, vector<4x64xf32>, vector<32x64xf32> -> vector<32x64xf32>
    %c0_4 = arith.constant 0 : index
    %c0_5 = arith.constant 0 : index
    %4 = vector.load %arg4[%c0_4, %c0_5] : memref<32x1xf32, #tpu.memory_space<vmem>>, vector<32x1xf32>
    %5 = vector.broadcast %4 : vector<32x1xf32> to vector<32x64xf32>
    %6 = arith.addf %3, %5 : vector<32x64xf32>
    %cst_6 = arith.constant 0.000000e+00 : f32
    %7 = vector.broadcast %cst_6 : f32 to vector<32x64xf32>
    %8 = arith.maximumf %6, %7 : vector<32x64xf32>
    %c0_7 = arith.constant 0 : index
    %c0_8 = arith.constant 0 : index
    %c0_9 = arith.constant 0 : index
    %9 = vector.load %arg5[%c0_7, %c0_8, %c0_9] : memref<1x32x64xf32, #tpu.memory_space<vmem>>, vector<1x32x64xf32>
    %10 = vector.shape_cast %9 : vector<1x32x64xf32> to vector<32x64xf32>
    %11 = vector.shape_cast %8 : vector<32x64xf32> to vector<1x32x64xf32>
    tpu.vector_store %arg5[%c0_7, %c0_8, %c0_9], %11 {strides = array<i32>} : memref<1x32x64xf32, #tpu.memory_space<vmem>>, vector<1x32x64xf32>,
    return
  }
  func.func @transform_0(%arg0: i32, %arg1: i32) -> (i32, i32, i32) {
    %c0_i32 = arith.constant 0 : i32
    %c0_i32_0 = arith.constant 0 : i32
    return %arg0, %c0_i32, %arg1 : i32, i32, i32
  }
  func.func @transform_1(%arg0: i32, %arg1: i32) -> (i32, i32) {
    %c0_i32 = arith.constant 0 : i32
    %c0_i32_0 = arith.constant 0 : i32
    %c0_i32_1 = arith.constant 0 : i32
    return %c0_i32, %c0_i32_0 : i32, i32
  }
  func.func @transform_2(%arg0: i32, %arg1: i32) -> (i32, i32) {
    %c0_i32 = arith.constant 0 : i32
    %c0_i32_0 = arith.constant 0 : i32
    %c0_i32_1 = arith.constant 0 : i32
    return %c0_i32, %c0_i32_0 : i32, i32
  }
  func.func @transform_3(%arg0: i32, %arg1: i32) -> (i32, i32, i32) {
    %c0_i32 = arith.constant 0 : i32
    %c0_i32_0 = arith.constant 0 : i32
    return %arg0, %c0_i32, %arg1 : i32, i32, i32
  }
}

</mosaic_0001>

<bundles_post_ra>
// kernel: tpu_custom_call.1
= control target key start
LH: loop header
LB: loop body
LE: loop exit
PB: predicated region body
PF: predicated region fallthrough
CT: control target
= control target key end

     0   :  { %8 = vsyncpa [#allocation3], 0  ;;  %s676_s0 = inlined_call_operand.vmem [shape: f32[2,4,64], index: 0, kind: input, shape index: {}]   ;;  %s677_s1 = inlined_call_operand.vmem [shape: f32[32,4], index: 1, kind: input, shape index: {}]   ;;  %s678_s2 = inlined_call_operand.vmem [shape: f32[32,1], index: 2, kind: input, shape index: {}]   ;;  %s679_s3 = inlined_call_operand.hbm [shape: f32[2,32,64], index: 3, kind: output, shape index: {}]  }
   0x1   :  { %10 = vsyncpa [#allocation3 + $0x1], 0  ;;  %s551_s12 = smov 0   ;;  %s553_s13 = smov 0  }
   0x2   :  { %s555_s14 = smov 0   ;;  %s557_s15 = smov 0  }
   0x3   :  { %s559_s16 = smov 0   ;;  %s561_s17 = smov 0  }
   0x4 LB: > { %s367_s18 = sadd.s32 4294967295, %s526_s17   ;;  %s368_s19 = sadd.s32 4294967294, %s526_s17   ;;  %s526_s17 = sphi %s561_s17, %s16_s17   ;;  %s522_s16 = sphi %s559_s16, %s686_s16   ;;  %s518_s15 = sphi %s557_s15, %s685_s15   ;;  %s514_s14 = sphi %s555_s14, %s684_s14   ;;  %s510_s13 = sphi %s553_s13, %s683_s13   ;;  %s506_s12 = sphi %s551_s12, %s682_s12  }
   0x5   : > { %s28_s20 = sadd.s32 1, %s522_s16  ;;  %s107_s21 = sadd.s32 1, %s514_s14 }
   0x6   : > { %p30_p0 = scmp.ge.s32.totalorder %s28_s20, 2  ;;  %p117_p1 = scmp.ne.s32.totalorder %s514_s14, %s510_s13 }
   0x7   : > { %p118_p2 = scmp.eq.s32.totalorder %s367_s18, 1  ;;  %p123_p3 = scmp.ne.s32.totalorder %s510_s13, %s506_s12 }
   0x8   : > { %s688_s20 = smov (%p30_p0, %s28_s20), 0  ;;  %p124_p5 = scmp.eq.s32.totalorder %s368_s19, 1 }
   0x9   : > { %p591_p4 = por %p118_p2, %p117_p1  ;;  %s102_s23 = ssub.s32 %s522_s16, %s688_s20 }
   0xa   : > { %p371_p6 = scmp.ge.s32.totalorder %s526_s17, 1  ;;  %p105_p7 = scmp.eq.s32.totalorder %s102_s23, 0 }
   0xb   : > { %p598_p8 = por %p124_p5, %p123_p3  ;;  %p158_p9 = scmp.lt.s32.totalorder %s526_s17, 3 }
   0xc   : > { %s604_s25 = scalar_select %p105_p7, %s514_s14, %s107_s21  }
   0xd   : > { %p159_p10 = pnand %p371_p6, %p158_p9 }
   0xe   : > { %p184_p11 = scmp.lt.s32.totalorder (!%p159_p10), %s518_s15, 1  ;;  %s181_s30 = sand.u32 (!%p159_p10), 1, %s510_s13  }
   0xf   : > { %162 = sbr.rel (%p159_p10) target bundleno = 169 (0xa9), region = 32  ;;  %s384_s5 = sshll.u32 (!%p159_p10), %s518_s15, 5 }
  0x10   : > { %s288_s8 = scalar_lea.hbm (!%p159_p10), %s679_s3, %s384_s5  ;;  %s468_s26 = scalar_lea.hbm (!%p159_p10), %s679_s3, 64 }
  0x11   : > { %s291_s11 = sshll.u32 (!%p159_p10), %s288_s8, 4  ;;  %s292_s11 = int_to_ptr.hbm [resolvable:$true] %s291_s11 }
  0x12   : > { %s462_s18 = sshra.s32 (!%p159_p10), %s292_s11, 4  ;;  %s463_s18 = int_to_ptr.hbm [resolvable:$true] %s462_s18 }
  0x13   : > { %s464_s19 = scalar_lea.hbm (!%p159_p10), %s463_s18, 32  ;;  %p469_p1 = scmp.lt.s32.totalorder (!%p159_p10), %s463_s18, %s679_s3 }
  0x14   : > { %v528_v0 = vmov 0   ;;  %v198_v1 = vld [vmem:[%s678_s2 + $0x10] sm:$0xff]  ;;  %s185_s28 = scalar_select %p184_p11, %s518_s15, 1  ;;  %v196_v2 = vld [vmem:[%s678_s2] sm:$0xff]  ;;  %vm233_vm0 = vcmask 1043456   ;;  %vm220_vm1 = vcmask 31744  }
  0x15   : > { %447 = vset.pattern.permute.xlu1 %v528_v0  ;;  %446 = vset.pattern.permute.xlu0 %v528_v0  ;;  %v192_v4 = vld [vmem:[%s677_s1] sm:$0xff]  ;;  %v193_v5 = vld [vmem:[%s677_s1 + $0x8] sm:$0xff]  ;;  %v194_v6 = vld [vmem:[%s677_s1 + $0x10] sm:$0xff]  ;;  %vm270_vm2 = vcmask 523264   ;;  %s276_s15 = scalar_lea.sflag [#allocation3], %s181_s30  ;;  %p465_p12 = scmp.ne.s32.totalorder %s463_s18, %s464_s19 }
  0x16   : > { %212 = vperm.xlu1 %447, %v198_v1   ;;  %202 = vperm.xlu0 %446, %v196_v2   ;;  %s373_s4 = sshll.u32 %s185_s28, 2  ;;  %v195_v7 = vld [vmem:[%s677_s1 + $0x18] sm:$0xff]  ;;  %v197_v9 = vld [vmem:[%s678_s2 + $0x8] sm:$0xff]  ;;  %p470_p2 = scmp.lt.s32.totalorder %s468_s26, %s464_s19 }
  0x17   : > { %s190_s7 = scalar_lea.vmem %s676_s0, %s373_s4  ;;  %v199_v8 = vld [vmem:[%s678_s2 + $0x18] sm:$0xff]  ;;  %s372_s4 = sshll.u32 %s181_s30, 5 }
  0x18   : > { %v191_v3 = vld [vmem:[%s190_s7] sm:$0xf]  ;;  %s183_s9 = scalar_lea.vmem [#allocation2], %s372_s4  ;;  %p466_p13 = pnand %p465_p12, %p591_p4 }
  0x19   : > { %374 = vmatpush.msk.msra.mxu0 %vm233_vm0, %v191_v3  ;;  %385 = vmatpush.msk.msra.mxu1 %vm233_vm0, %v191_v3  ;;  %s289_s10 = sshll.u32 %s183_s9, 4  ;;  %p471_p3 = por %p470_p2, %p469_p1  ;;  %s290_s10 = int_to_ptr.vmem [resolvable:$true] %s289_s10 }
  0x1a   : > { %386 = vmatpush.msk.msra.mxu2 %vm233_vm0, %v191_v3  ;;  %387 = vmatpush.msk.msra.mxu3 %vm233_vm0, %v191_v3  ;;  %p467_p0 = pneg %p466_p13 }
  0x1b   : > { %375 = vmatmul.msk.f32.vlgmr.msra.gmra.mxu0 %vm220_vm1, %v192_v4  ;;  %376 = vmatmul.msk.f32.vlgmr.msra.gmra.mxu1 %vm220_vm1, %v193_v5 }
  0x1c   : > { %377 = vmatmul.msk.f32.vlgmr.msra.gmra.mxu2 %vm220_vm1, %v194_v6  ;;  %378 = vmatmul.msk.f32.vlgmr.msra.gmra.mxu3 %vm220_vm1, %v195_v7  ;;  %p472_p5 = pnand %p471_p3, %p467_p0 }
  0x1e   : > { %217 = vperm.xlu1 %447, %v199_v8   ;;  %207 = vperm.xlu0 %446, %v197_v9  }
  0x88   : > { %v203_v10 = vpop.permute.xlu0 %202  ;;  %v213_v11 = vpop.permute.xlu1 %212 }
  0x90   : > { %v208_v12 = vpop.permute.xlu0 %207  ;;  %v218_v19 = vpop.permute.xlu1 %217 }
  0x98   : > { %v254_v13 = vpop.f32.mrf.mxu0  ;;  %v257_v14 = vpop.f32.mrf.mxu1 }
  0x99   : > { %v255_v15 = vadd.f32 %v254_v13, %v203_v10  ;;  %v258_v16 = vadd.f32 %v257_v14, %v208_v12 }
  0x9b   : > { %v266_v17 = vmax.f32 %v255_v15, 0.0  ;;  %v267_v18 = vmax.f32 %v258_v16, 0.0 }
  0x9d   : > { %271 = vst.msk [vmem:[%s183_s9] sm:$0xff] %vm270_vm2, %v266_v17 }
  0x9e   : > { %272 = vst.msk [vmem:[%s183_s9 + $0x8] sm:$0xff] %vm270_vm2, %v267_v18 }
  0x9f   : > { %v260_v20 = vpop.f32.mrf.mxu2  ;;  %v263_v21 = vpop.f32.mrf.mxu3 }
  0xa0   : > { %v261_v22 = vadd.f32 %v260_v20, %v213_v11  ;;  %v264_v23 = vadd.f32 %v263_v21, %v218_v19 }
  0xa2   : > { %v268_v24 = vmax.f32 %v261_v22, 0.0  ;;  %v269_v25 = vmax.f32 %v264_v23, 0.0 }
  0xa4   : > { %273 = vst.msk [vmem:[%s183_s9 + $0x10] sm:$0xff] %vm270_vm2, %v268_v24 }
  0xa5   : > { %274 = vst.msk [vmem:[%s183_s9 + $0x18] sm:$0xff] %vm270_vm2, %v269_v25 }
  0xa6   : > { %475 = shalt.err (!%p472_p5)
}
  0xa7   : > { %s529_s29 = smov 128   ;;  %s530_s30 = smov 8  }
  0xa8   : > { %388 = dma.vmem_to_hbm [thread:$0]  (%p591_p4), %s290_s10, 512, %s292_s11, %s276_s15, %s529_s29, %s529_s29, %s530_s30  }
  0xa9 PF: > { %p394_p6 = scmp.ge.s32.totalorder %s526_s17, 2  ;;  %s306_s4 = sand.u32 1, %s506_s12  }
  0xaa   : > { %s307_s5 = scalar_lea.sflag [#allocation3], %s306_s4 }
  0xab   : > { %p391_p7 = pnand %p394_p6, %p598_p8 }
  0xad   : > { %p392_p9 = pneg %p391_p7 }
  0xaf   : > { %501 = dma.done.wait (%p392_p9), %s307_s5, 512  }
  0xb0   : > { %503 = vsyncadd (%p392_p9), %s307_s5, 4294966784  ;;  %s16_s17 = sadd.s32 1, %s526_s17   ;;  %s682_s12 = smov %s510_s13 }
  0xb1   : > { %p13_p10 = scmp.ge.s32.totalorder %s16_s17, 4   ;;  %s683_s13 = smov %s514_s14 }
  0xb2   : > { %s684_s14 = smov %s604_s25  ;;  %s685_s15 = smov %s522_s16 }
  0xb3   : > { %s686_s16 = smov %s688_s20  ;;  %15 = sbr.rel (!%p13_p10) target bundleno = 4 (0x4), region = 67 }
  0xb8   :  { %313 = vsyncpa [#allocation3], 1 }
  0xb9   :  { %315 = vsyncpa [#allocation3 + $0x1], 1 }

</bundles_post_ra>
